<compile_context>
chip_gen: v6e
topology: v6e:2x2x1
jax: 0.10.0
libtpu: 0.0.40
codegen_flags: <defaults>
</compile_context>

<pallas_src>
import functools

import jax
import jax.numpy as jnp
from jax import lax
from jax.experimental import pallas as pl
from jax.experimental.pallas import tpu as pltpu

_LANES = 128
_SUBLANES = 8
_NEG_BIG = -1e30  # bias for padded output columns -> exp() == 0


def _round_up(x, m):
    return (x + m - 1) // m * m


def cluster_kernel(h_ref, w_ref, b_ref, o_ref, *, out_dims):
    # h_ref: (TILE_N, in_dims); w_ref: (OUT_PAD, in_dims); b_ref: (1, OUT_PAD)
    # o_ref: (TILE_N, out_dims)  -- un-padded output block; the store masks the
    # padded lanes, so no wrapper-side slice / extra HBM pass is needed.
    # logits = h @ W.T  (contract on in_dims; weight in native PyTorch layout)
    s = lax.dot_general(
        h_ref[...], w_ref[...],
        dimension_numbers=(((1,), (1,)), ((), ())),
        preferred_element_type=jnp.float32,
    )
    s = s + b_ref[...]                                  # (TILE_N, OUT_PAD)
    # Numerically-stable softmax along the last axis; padded columns carry a
    # -1e30 bias (and zero weight rows) so exp(s - m) == 0 there and the
    # denominator is unchanged.
    m = jnp.max(s, axis=-1, keepdims=True)
    e = jnp.exp(s - m)
    denom = jnp.sum(e, axis=-1, keepdims=True)
    out = e / denom                                     # exact normalization
    o_ref[...] = out[:, :out_dims].astype(o_ref.dtype)


def prepare_cluster_params(weight, bias, dtype=jnp.float32):
    """Pad Linear params to a lane-dense feature axis ONCE (init time).

    weight: (out_dims, in_dims)  PyTorch nn.Linear layout.
    bias:   (out_dims,)
    Returns (w_p, b_p) with the feature axis padded to a multiple of 128;
    padded weight rows are zero and padded bias entries are -1e30 (required
    invariant for the in-kernel softmax padding trick).
    """
    out_dims, in_dims = weight.shape
    out_pad = _round_up(out_dims, _LANES)
    w_p = jnp.pad(weight.astype(dtype), ((0, out_pad - out_dims), (0, 0)))
    b_p = jnp.full((1, out_pad), _NEG_BIG, dtype=jnp.float32)
    b_p = b_p.at[0, :out_dims].set(bias.astype(jnp.float32))
    return w_p, b_p


def cluster_layer(h, w_p, b_p, out_dims, *,
                  tile_budget_bytes=24 << 20, max_tile_n=4096, min_grid_steps=4):
    """softmax(h @ weight.T + bias, axis=-1) with pre-padded params.

    h:   (N, in_dims)
    w_p: (OUT_PAD, in_dims)  from prepare_cluster_params
    b_p: (1, OUT_PAD)        from prepare_cluster_params
    out_dims: true (un-padded) number of output features (static Python int).
    """
    n, in_dims = h.shape
    out_pad, w_in = w_p.shape
    assert w_in == in_dims and b_p.shape == (1, out_pad)
    elt = jnp.dtype(h.dtype).itemsize

    # ---- tile_n from a VMEM budget (safe on v7x: <= ~24 MiB of tiles) -------
    weight_bytes = out_pad * in_dims * elt + out_pad * 4
    per_row = (2 * in_dims * elt          # double-buffered h tile
               + 2 * out_dims * elt       # double-buffered output tile
               + 2 * out_pad * 4)         # f32 intermediates (logits, exp)
    tile_n = (tile_budget_bytes - weight_bytes) // max(per_row, 1)
    tile_n = int(max(_SUBLANES, min(max_tile_n, tile_n)))
    tile_n = min(tile_n, _round_up(n, _SUBLANES))
    # Keep >= min_grid_steps grid steps when N allows so the "parallel" axis
    # shards across both TensorCores on v7x (1 TC/chip on v5e/v6e: harmless).
    if n > min_grid_steps * _SUBLANES:
        tile_n = min(tile_n, _round_up(-(-n // min_grid_steps), _SUBLANES))
    tile_n = _round_up(tile_n, _SUBLANES)
    grid = (pl.cdiv(n, tile_n),)

    # ---- VMEM budget: actual usage, capped at 64 MiB (v7x physical) ---------
    vmem_bytes = (2 * tile_n * in_dims * elt      # h tiles (double-buffered)
                  + 2 * tile_n * out_dims * elt   # out tiles (double-buffered)
                  + 2 * tile_n * out_pad * 4      # f32 intermediates headroom
                  + 2 * weight_bytes              # resident weight + bias
                  + (2 << 20))                    # slack
    vmem_limit = int(min(max(vmem_bytes, 4 << 20), 64 << 20))

    cost = pl.CostEstimate(
        flops=2 * n * in_dims * out_pad,
        transcendentals=n * out_pad,
        bytes_accessed=(n * in_dims + out_pad * in_dims + out_pad
                        + n * out_dims) * elt,
    )

    return pl.pallas_call(
        functools.partial(cluster_kernel, out_dims=out_dims),
        out_shape=jax.ShapeDtypeStruct((n, out_dims), h.dtype),
        grid_spec=pl.GridSpec(
            grid=grid,
            in_specs=[
                pl.BlockSpec((tile_n, in_dims), lambda i: (i, 0)),   # row tile
                pl.BlockSpec((out_pad, in_dims), lambda i: (0, 0)),  # VMEM-resident
                pl.BlockSpec((1, out_pad), lambda i: (0, 0)),        # VMEM-resident
            ],
            out_specs=pl.BlockSpec((tile_n, out_dims), lambda i: (i, 0)),
        ),
        compiler_params=pltpu.CompilerParams(
            dimension_semantics=("parallel",),
            vmem_limit_bytes=vmem_limit,
        ),
        cost_estimate=cost,
    )(h, w_p, b_p)


def reference(h, weight, bias):
    s = h @ weight.T + bias
    s = s - jnp.max(s, axis=-1, keepdims=True)
    e = jnp.exp(s)
    return e / jnp.sum(e, axis=-1, keepdims=True)


def _check(h, w_p, b_p, weight, bias, out_dims):
    out = jax.block_until_ready(cluster_layer(h, w_p, b_p, out_dims))
    ref = reference(h, weight, bias)
    assert out.shape == ref.shape
    assert jnp.allclose(out, ref, atol=1e-4, rtol=1e-4), "mismatch vs reference"
    assert jnp.allclose(jnp.sum(out, axis=-1), jnp.ones((h.shape[0],)), atol=1e-4)


if __name__ == "__main__":
    in_dims, out_dims = 32, 16

    key = jax.random.PRNGKey(0)
    kh, kw, kb, kh2 = jax.random.split(key, 4)

    # deterministic parameter init (mimic PyTorch Linear: U(-1/sqrt(in), 1/sqrt(in)))
    bound = 1.0 / jnp.sqrt(jnp.float32(in_dims))
    weight = jax.random.uniform(kw, (out_dims, in_dims), jnp.float32, -bound, bound)
    bias = jax.random.uniform(kb, (out_dims,), jnp.float32, -bound, bound)

    # pad parameters once (hoisted out of the per-call path)
    w_p, b_p = prepare_cluster_params(weight, bias)

    # small case (single grid step)
    h = jax.random.normal(kh, (8, in_dims), jnp.float32)
    _check(h, w_p, b_p, weight, bias, out_dims)

    # multi-tile case with a partial last block (exercises pipelined grid and
    # the >=4-step megacore split)
    h2 = jax.random.normal(kh2, (600, in_dims), jnp.float32)
    _check(h2, w_p, b_p, weight, bias, out_dims)

    print("KERNEL_OK")
</pallas_src>

<mosaic_0001>
module attributes {stable_mosaic.version = 11 : i64} {
  func.func @cluster_kernel(%arg0: i32, %arg1: memref<8x32xf32, #tpu.memory_space<vmem>>, %arg2: memref<128x32xf32, #tpu.memory_space<vmem>>, %arg3: memref<1x128xf32, #tpu.memory_space<vmem>>, %arg4: memref<8x16xf32, #tpu.memory_space<vmem>>) attributes {dimension_semantics = [#tpu.dimension_semantics<parallel>], iteration_bounds = array<i64: 1>, scalar_prefetch = 0 : i64, scratch_operands = 0 : i64, tpu.core_type = #tpu.core_type<tc>, window_params = [{transform_indices = @transform_0, window_bounds = array<i64: 8, 32>}, {pipeline_mode = #tpu.pipeline_mode<synchronous>, transform_indices = @transform_1, window_bounds = array<i64: 128, 32>}, {pipeline_mode = #tpu.pipeline_mode<synchronous>, transform_indices = @transform_2, window_bounds = array<i64: 1, 128>}, {transform_indices = @transform_3, window_bounds = array<i64: 8, 16>}]} {
    %c0 = arith.constant 0 : index
    %c0_0 = arith.constant 0 : index
    %0 = vector.load %arg1[%c0, %c0_0] : memref<8x32xf32, #tpu.memory_space<vmem>>, vector<8x32xf32>
    %c0_1 = arith.constant 0 : index
    %c0_2 = arith.constant 0 : index
    %1 = vector.load %arg2[%c0_1, %c0_2] : memref<128x32xf32, #tpu.memory_space<vmem>>, vector<128x32xf32>
    %cst = arith.constant dense<0.000000e+00> : vector<8x128xf32>
    %2 = tpu.matmul %0, %1, %cst {dimension_numbers = #tpu.dot_dimension_numbers<[1], [1], [0], [0], [0, 0, 1, 0], [], []>} : vector<8x32xf32>, vector<128x32xf32>, vector<8x128xf32> -> vector<8x128xf32>
    %c0_3 = arith.constant 0 : index
    %c0_4 = arith.constant 0 : index
    %3 = vector.load %arg3[%c0_3, %c0_4] : memref<1x128xf32, #tpu.memory_space<vmem>>, vector<1x128xf32>
    %4 = vector.broadcast %3 : vector<1x128xf32> to vector<8x128xf32>
    %5 = arith.addf %2, %4 : vector<8x128xf32>
    %cst_5 = arith.constant dense<0xFF800000> : vector<8xf32>
    %6 = vector.multi_reduction <maximumf>, %5, %cst_5 [1] : vector<8x128xf32> to vector<8xf32>
    %7 = vector.shape_cast %6 : vector<8xf32> to vector<8x1xf32>
    %8 = vector.broadcast %7 : vector<8x1xf32> to vector<8x128xf32>
    %9 = arith.subf %5, %8 : vector<8x128xf32>
    %10 = math.exp %9 : vector<8x128xf32>
    %cst_6 = arith.constant dense<0.000000e+00> : vector<8xf32>
    %11 = vector.multi_reduction <add>, %10, %cst_6 [1] : vector<8x128xf32> to vector<8xf32>
    %12 = vector.shape_cast %11 : vector<8xf32> to vector<8x1xf32>
    %13 = vector.broadcast %12 : vector<8x1xf32> to vector<8x128xf32>
    %14 = arith.divf %10, %13 : vector<8x128xf32>
    %15 = vector.extract_strided_slice %14 {offsets = [0, 0], sizes = [8, 16], strides = [1, 1]} : vector<8x128xf32> to vector<8x16xf32>
    %c0_7 = arith.constant 0 : index
    %c0_8 = arith.constant 0 : index
    %16 = vector.load %arg4[%c0_7, %c0_8] : memref<8x16xf32, #tpu.memory_space<vmem>>, vector<8x16xf32>
    tpu.vector_store %arg4[%c0_7, %c0_8], %15 {strides = array<i32>} : memref<8x16xf32, #tpu.memory_space<vmem>>, vector<8x16xf32>,
    return
  }
  func.func @transform_0(%arg0: i32) -> (i32, i32) {
    %c0_i32 = arith.constant 0 : i32
    %c0_i32_0 = arith.constant 0 : i32
    return %arg0, %c0_i32 : i32, i32
  }
  func.func @transform_1(%arg0: i32) -> (i32, i32) {
    %c0_i32 = arith.constant 0 : i32
    %c0_i32_0 = arith.constant 0 : i32
    %c0_i32_1 = arith.constant 0 : i32
    return %c0_i32, %c0_i32_0 : i32, i32
  }
  func.func @transform_2(%arg0: i32) -> (i32, i32) {
    %c0_i32 = arith.constant 0 : i32
    %c0_i32_0 = arith.constant 0 : i32
    %c0_i32_1 = arith.constant 0 : i32
    return %c0_i32, %c0_i32_0 : i32, i32
  }
  func.func @transform_3(%arg0: i32) -> (i32, i32) {
    %c0_i32 = arith.constant 0 : i32
    %c0_i32_0 = arith.constant 0 : i32
    return %arg0, %c0_i32 : i32, i32
  }
}

</mosaic_0001>

<bundles_post_ra>
// kernel: tpu_custom_call.1
= control target key start
LH: loop header
LB: loop body
LE: loop exit
PB: predicated region body
PF: predicated region fallthrough
CT: control target
= control target key end

     0   :  { %vm39_vm0 = vcmask 261120   ;;  %v285_v1 = vmov 0.0   ;;  %vm286_vm1 = vmmov 0   ;;  %s382_s0 = inlined_call_operand.vmem [shape: f32[8,32], index: 0, kind: input, shape index: {}]   ;;  %s383_s1 = inlined_call_operand.vmem [shape: f32[128,32], index: 1, kind: input, shape index: {}]   ;;  %s384_s2 = inlined_call_operand.vmem [shape: f32[1,128], index: 2, kind: input, shape index: {}]   ;;  %s385_s3 = inlined_call_operand.hbm [shape: f32[8,16], index: 3, kind: output, shape index: {}]  }
   0x1   :  { %v31_v0 = vld [vmem:[%s383_s1 + $0x78] sm:$0xff]  ;;  %221 = vmatprep.subr.mxu0 %v285_v1  ;;  %253 = vmatprep.mubr.msk.f32.mxu0 %vm286_vm1, %v285_v1  ;;  %v30_v2 = vld [vmem:[%s383_s1 + $0x70] sm:$0xff] }
   0x2   :  { %222 = vmatpush3.xpose.msk.msra.mxu0 %vm39_vm0, %v31_v0 }
   0x3   :  { %223 = vmatprep.subr.mxu0 %v285_v1 }
   0x6   :  { %224 = vmatpush3.xpose.msk.msra.mxu0 %vm39_vm0, %v30_v2 }
   0x7   :  { %8 = vsyncpa [#allocation3], 0  ;;  %225 = vmatprep.subr.mxu0 %v285_v1  ;;  %v29_v3 = vld [vmem:[%s383_s1 + $0x68] sm:$0xff]  ;;  %v28_v4 = vld [vmem:[%s383_s1 + $0x60] sm:$0xff]  ;;  %vm170_vm2 = vcmask 130048  }
   0x8   :  { %v27_v5 = vld [vmem:[%s383_s1 + $0x58] sm:$0xff]  ;;  %v26_v6 = vld [vmem:[%s383_s1 + $0x50] sm:$0xff]  ;;  %v25_v7 = vld [vmem:[%s383_s1 + $0x48] sm:$0xff] }
   0x9   :  { %v24_v8 = vld [vmem:[%s383_s1 + $0x40] sm:$0xff]  ;;  %v23_v9 = vld [vmem:[%s383_s1 + $0x38] sm:$0xff]  ;;  %v22_v10 = vld [vmem:[%s383_s1 + $0x30] sm:$0xff] }
   0xa   :  { %226 = vmatpush3.xpose.msk.msra.mxu0 %vm39_vm0, %v29_v3  ;;  %v21_v11 = vld [vmem:[%s383_s1 + $0x28] sm:$0xff]  ;;  %v20_v12 = vld [vmem:[%s383_s1 + $0x20] sm:$0xff]  ;;  %v19_v13 = vld [vmem:[%s383_s1 + $0x18] sm:$0xff] }
   0xb   :  { %227 = vmatprep.subr.mxu0 %v285_v1  ;;  %v18_v14 = vld [vmem:[%s383_s1 + $0x10] sm:$0xff]  ;;  %v17_v15 = vld [vmem:[%s383_s1 + $0x8] sm:$0xff]  ;;  %v16_v16 = vld [vmem:[%s383_s1] sm:$0xff]  ;;  %s287_s1 = smov [#allocation2]  }
   0xc   :  { %v15_v17 = vld [vmem:[%s382_s0] sm:$0xff]  ;;  %s178_s0 = sshll.u32 %s287_s1, 4  ;;  %s179_s0 = int_to_ptr.vmem [resolvable:$true] %s178_s0 }
   0xd   :  { %v186_v18 = vld [vmem:[%s384_s2] ss:$0 sm:$0xff]  ;;  %s263_s2 = scalar_lea.vmem %s179_s0, 128  ;;  %p268_p1 = scmp.lt.s32.totalorder %s179_s0, %s179_s0 }
   0xe   :  { %228 = vmatpush3.xpose.msk.msra.mxu0 %vm39_vm0, %v28_v4  ;;  %p264_p0 = scmp.ne.s32.totalorder %s179_s0, %s263_s2  ;;  %p269_p2 = scmp.lt.s32.totalorder %s263_s2, %s263_s2 }
   0xf   :  { %229 = vmatprep.subr.mxu0 %v285_v1 }
  0x10   :  { %p270_p3 = por %p269_p2, %p268_p1 }
  0x12   :  { %230 = vmatpush3.xpose.msk.msra.mxu0 %vm39_vm0, %v27_v5  ;;  %p271_p4 = pnand %p270_p3, %p264_p0 }
  0x13   :  { %231 = vmatprep.subr.mxu0 %v285_v1 }
  0x16   :  { %232 = vmatpush3.xpose.msk.msra.mxu0 %vm39_vm0, %v26_v6 }
  0x17   :  { %233 = vmatprep.subr.mxu0 %v285_v1 }
  0x1a   :  { %234 = vmatpush3.xpose.msk.msra.mxu0 %vm39_vm0, %v25_v7 }
  0x1b   :  { %235 = vmatprep.subr.mxu0 %v285_v1 }
  0x1e   :  { %236 = vmatpush3.xpose.msk.msra.mxu0 %vm39_vm0, %v24_v8 }
  0x1f   :  { %237 = vmatprep.subr.mxu0 %v285_v1 }
  0x22   :  { %238 = vmatpush3.xpose.msk.msra.mxu0 %vm39_vm0, %v23_v9 }
  0x23   :  { %239 = vmatprep.subr.mxu0 %v285_v1 }
  0x26   :  { %240 = vmatpush3.xpose.msk.msra.mxu0 %vm39_vm0, %v22_v10 }
  0x27   :  { %241 = vmatprep.subr.mxu0 %v285_v1 }
  0x2a   :  { %242 = vmatpush3.xpose.msk.msra.mxu0 %vm39_vm0, %v21_v11 }
  0x2b   :  { %243 = vmatprep.subr.mxu0 %v285_v1 }
  0x2e   :  { %244 = vmatpush3.xpose.msk.msra.mxu0 %vm39_vm0, %v20_v12 }
  0x2f   :  { %245 = vmatprep.subr.mxu0 %v285_v1 }
  0x32   :  { %246 = vmatpush3.xpose.msk.msra.mxu0 %vm39_vm0, %v19_v13 }
  0x33   :  { %247 = vmatprep.subr.mxu0 %v285_v1 }
  0x36   :  { %248 = vmatpush3.xpose.msk.msra.mxu0 %vm39_vm0, %v18_v14 }
  0x37   :  { %249 = vmatprep.subr.mxu0 %v285_v1 }
  0x3a   :  { %250 = vmatpush3.xpose.msk.msra.mxu0 %vm39_vm0, %v17_v15 }
  0x3b   :  { %251 = vmatprep.subr.mxu0 %v285_v1 }
  0x3e   :  { %252 = vmatpush3.xpose.msk.msra.mxu0 %vm39_vm0, %v16_v16 }
  0x41   :  { %254 = vmatmul.mubr.msk.f32.vlgmr.msra.gmra.mxu0 %vm39_vm0, %v15_v17 }
 0x101   :  { %v157_v19 = vpop.f32.mrf.mxu0 }
 0x102   :  { %v158_v20 = vadd.f32 %v186_v18, %v157_v19 }
 0x103   :  { %v255_v21 = vpop.f32.mrf.mxu0 }
 0x104   :  { %161 = vmax.xlane.f32.xlu0 %v158_v20 }
 0x18d   :  { %v162_v22 = vpop.xlane.xlu0 %161 }
 0x18e   :  { %v163_v23 = vsub.f32 %v158_v20, %v162_v22 }
 0x190   :  { %v164_v24 = vmul.f32 1.442695, %v163_v23 }
 0x192   :  { %259 = vpow2.f32 %v164_v24 }
 0x19f   :  { %v260_v25 = vpop.eup %259 }
 0x1a0   :  { %166 = vadd.xlane.f32.xlu0 %v260_v25 }
 0x229   :  { %v167_v26 = vpop.xlane.xlu0 %166 }
 0x22a   :  { %261 = vrcp.f32 %v167_v26 }
 0x237   :  { %v262_v27 = vpop.eup %261 }
 0x238   :  { %v169_v28 = vmul.f32 %v262_v27, %v260_v25 }
 0x23a   :  { %171 = vst.msk [vmem:[#allocation2] sm:$0xff] %vm170_vm2, %v169_v28 }
 0x23b   :  { %274 = shalt.err (!%p271_p4)
}
 0x23c   :  { %181 = dma.vmem_to_hbm [thread:$0]  %s179_s0, 128, %s385_s3, [#allocation3]  }
 0x23d   :  { %283 = dma.done.wait [#allocation3], 128  }
 0x23e   :  { %284 = vsyncadd [#allocation3], 4294967168 }
 0x23f   :  { %185 = vsyncpa [#allocation3], 1 }

</bundles_post_ra>
